<compile_context>
chip_gen: v7x
topology: tpu7x:2x2x1
jax: 0.10.0
libtpu: 0.0.40
codegen_flags: <defaults>
</compile_context>

<pallas_src>
import math
from functools import partial

import jax
import jax.numpy as jnp
from jax.experimental import pallas as pl
from jax.experimental.pallas import tpu as pltpu


# ----------------------------- Pallas kernel --------------------------------

def _maf_kernel(xc_ref, w1_ref, b1_ref, w2_ref, b2_ref, u_ref, ld_ref, *,
                num_input, group, use_tanh, scale, alpha_clip):
    D, G = num_input, group
    GD = G * D

    xc = xc_ref[...]                      # [tb, G*(D+C)] f32, packed G rows/row
    x = xc[:, :GD]                        # f32 x kept for the epilogue

    # Layer 1 (block-diagonal, MADE mask + context fused): one bf16 MXU matmul
    # with f32 accumulation, folded bias, ReLU.
    h = jnp.dot(xc.astype(jnp.bfloat16), w1_ref[...],
                preferred_element_type=jnp.float32) + b1_ref[...]
    h = jnp.maximum(h, 0.0)

    # Layer 2: mu and alpha heads merged into a single [tb, 2*G*D] matmul.
    ma = jnp.dot(h.astype(jnp.bfloat16), w2_ref[...],
                 preferred_element_type=jnp.float32) + b2_ref[...]
    mu = ma[:, :GD]                       # [tb, G*D]  (same lane layout as x)
    alpha = ma[:, GD:]                    # [tb, G*D]

    if use_tanh:
        alpha = jnp.tanh(alpha)           # EUP
    elif alpha_clip is not None:
        # Opt-in guard against exp(-alpha) overflow (module has no clip either).
        alpha = jnp.clip(alpha, -alpha_clip, alpha_clip)

    u = (x - mu) * jnp.exp(-alpha)
    if scale != 1.0:                      # module sets scale = 1.0
        u = u * scale
    u_ref[...] = u.astype(u_ref.dtype)

    # Segmented log-det: per packed group g, ld = -sum_d alpha[:, g*D + d].
    # Done in f32 on the vector units (16-lane slice + reduce), lane-concat
    # into a [tb, G] row; single store.
    parts = [-jnp.sum(alpha[:, g * D:(g + 1) * D], axis=-1, keepdims=True)
             for g in range(G)]
    ld = jnp.concatenate(parts, axis=-1) if G > 1 else parts[0]
    if scale != 1.0:
        ld = ld + num_input * math.log(scale)
    ld_ref[...] = ld


# ------------------------------ Wrapper --------------------------------------

def _round_up(n, m):
    return ((n + m - 1) // m) * m


def _choose_tile(rows, tile_b):
    """Packed-rows per grid step: >=512 floor, split in two for v7x if possible."""
    tile_b = max(8, _round_up(tile_b, 8))
    full = _round_up(rows, 8)
    if full <= tile_b:
        half = _round_up((rows + 1) // 2, 8)
        # v7x has 2 TensorCores: use 2 "parallel" tiles only if each half still
        # clears the ~0.35us/step overhead floor; otherwise one tile.
        return half if half >= 512 else full
    return tile_b


def autoregressive_inverse_and_log_prob(x, context, kparams, *,
                                        use_tanh=True, scale=1.0,
                                        tile_b=1024, alpha_clip=None):
    """Returns (u, log_det) matching the PyTorch module's forward().

    kparams is the kernel-ready dict from prepare_kernel_params(): MADE masks
    applied, layer-1 fused with context, batch folded block-diagonally with
    group size G, weights in bf16.
    """
    B, D = x.shape
    C = context.shape[-1]
    G = kparams["group"]
    GD, GC = G * D, G * C

    rows = -(-B // G)                             # packed rows (G batch rows each)
    tb = _choose_tile(rows, tile_b)
    rows_pad = _round_up(rows, tb)
    b_pad = rows_pad * G

    xf = x.astype(jnp.float32)
    cf = context.astype(jnp.float32)
    if b_pad != B:
        xf = jnp.pad(xf, ((0, b_pad - B), (0, 0)))   # zero-pad BEFORE the fold
        cf = jnp.pad(cf, ((0, b_pad - B), (0, 0)))
    # Packed layout per row r: [x_{rG},..,x_{rG+G-1}, ctx_{rG},..,ctx_{rG+G-1}]
    xc_p = jnp.concatenate([xf.reshape(rows_pad, GD),
                            cf.reshape(rows_pad, GC)], axis=-1)

    grid = (rows_pad // tb,)
    batch_spec = lambda w: pl.BlockSpec((tb, w), lambda i: (i, 0))
    resident = lambda shp: pl.BlockSpec(shp, lambda i: (0,) * len(shp))

    kernel = partial(_maf_kernel, num_input=D, group=G, use_tanh=use_tanh,
                     scale=scale, alpha_clip=alpha_clip)

    u_p, ld_p = pl.pallas_call(
        kernel,
        out_shape=(jax.ShapeDtypeStruct((rows_pad, GD), jnp.float32),
                   jax.ShapeDtypeStruct((rows_pad, G), jnp.float32)),
        grid=grid,
        in_specs=[
            batch_spec(GD + GC),                     # xc_p  [rows, G*(D+C)]
            resident(kparams["w1bd"].shape),         # W1bd  [G*(D+C), G*H] bf16
            resident(kparams["b1bd"].shape),         # b1bd  [1, G*H]       f32
            resident(kparams["w2bd"].shape),         # W2bd  [G*H, 2*G*D]   bf16
            resident(kparams["b2bd"].shape),         # b2bd  [1, 2*G*D]     f32
        ],
        out_specs=(batch_spec(GD), batch_spec(G)),
        compiler_params=pltpu.CompilerParams(
            dimension_semantics=("parallel",)),      # batch tiles over v7x's 2 TCs
    )(xc_p, kparams["w1bd"], kparams["b1bd"], kparams["w2bd"], kparams["b2bd"])

    u = u_p.reshape(rows_pad * G, D)[:B]
    log_det = ld_p.reshape(rows_pad * G)[:B]
    return u, log_det


# --------------------------- Parameter / mask setup ---------------------------

def make_made_params(key, num_input, num_context, num_hidden):
    """Deterministic MADE parameters + autoregressive masks (raw, f32)."""
    D, C, H = num_input, num_context, num_hidden
    k1, k2, k3 = jax.random.split(key, 3)

    # Degrees: inputs 1..D, hidden sequential mod (D-1)+1, outputs = inputs x2.
    # TODO(synk): only 'sequential' hidden_degrees and ReLU activation are
    # implemented; 'random' degrees / other activations would be param-prep-only.
    in_deg = jnp.arange(1, D + 1)
    hid_deg = (jnp.arange(H) % max(D - 1, 1)) + 1
    out_deg = jnp.tile(in_deg, 2)

    mask1 = (hid_deg[None, :] >= in_deg[:, None]).astype(jnp.float32)   # [D, H]
    mask2 = (out_deg[None, :] > hid_deg[:, None]).astype(jnp.float32)   # [H, 2D]

    w1 = jax.random.normal(k1, (D, H), jnp.float32) * (1.0 / math.sqrt(D))
    wc = jax.random.normal(k2, (C, H), jnp.float32) * (1.0 / math.sqrt(C))
    w2 = jax.random.normal(k3, (H, 2 * D), jnp.float32) * (1.0 / math.sqrt(H))
    b1 = jnp.zeros((H,), jnp.float32)
    bc = jnp.zeros((H,), jnp.float32)
    b2 = jnp.zeros((2 * D,), jnp.float32)

    return dict(w1=w1, b1=b1, wc=wc, bc=bc, w2=w2, b2=b2,
                mask1=mask1, mask2=mask2)


def prepare_kernel_params(params, num_input, *, group=4):
    """One-time prep: apply MADE masks, fuse context, build block-diagonal
    weights that fold `group` batch rows per MXU pass, merge mu/alpha heads,
    cast weights to bf16.  group=4 fits v5e's 128x128 MXU; use 8 on v6e/v7x."""
    D = num_input
    H = params["w1"].shape[1]
    G = group
    eye = jnp.eye(G, dtype=jnp.float32)

    w1m = params["w1"] * params["mask1"]                     # [D, H]
    w2m = params["w2"] * params["mask2"]                     # [H, 2D]

    # Layer 1: input lanes = [x of group 0..G-1 | ctx of group 0..G-1],
    # output lanes = [h of group 0..G-1].
    w1bd = jnp.concatenate([jnp.kron(eye, w1m),              # [G*D, G*H]
                            jnp.kron(eye, params["wc"])],    # [G*C, G*H]
                           axis=0)                           # [G*(D+C), G*H]
    b1bd = jnp.tile(params["b1"] + params["bc"], G).reshape(1, G * H)

    # Layer 2: output lanes = [mu_0..mu_{G-1} | alpha_0..alpha_{G-1}],
    # each block D lanes (mu blocks share the lane layout of packed x).
    w2bd = jnp.concatenate([jnp.kron(eye, w2m[:, :D]),       # [G*H, G*D]  mu
                            jnp.kron(eye, w2m[:, D:])],      # [G*H, G*D]  alpha
                           axis=1)                           # [G*H, 2*G*D]
    b2bd = jnp.concatenate([jnp.tile(params["b2"][:D], G),
                            jnp.tile(params["b2"][D:], G)]).reshape(1, 2 * G * D)

    return dict(group=G,
                w1bd=w1bd.astype(jnp.bfloat16),
                b1bd=b1bd.astype(jnp.float32),
                w2bd=w2bd.astype(jnp.bfloat16),
                b2bd=b2bd.astype(jnp.float32))


# Pure-JAX reference with the SAME precision policy as the kernel (bf16 matmul
# inputs/weights, f32 accumulation, f32 epilogue) straight from the raw MADE
# parameters -- independent of the block-diagonal fold.
def _reference(x, ctx, raw, *, num_input, use_tanh=True, scale=1.0):
    D = num_input
    w1m = (raw["w1"] * raw["mask1"]).astype(jnp.bfloat16)
    wc = raw["wc"].astype(jnp.bfloat16)
    w2m = (raw["w2"] * raw["mask2"]).astype(jnp.bfloat16)
    h = (jnp.dot(x.astype(jnp.bfloat16), w1m, preferred_element_type=jnp.float32)
         + jnp.dot(ctx.astype(jnp.bfloat16), wc, preferred_element_type=jnp.float32)
         + raw["b1"] + raw["bc"])
    h = jnp.maximum(h, 0.0)
    ma = jnp.dot(h.astype(jnp.bfloat16), w2m,
                 preferred_element_type=jnp.float32) + raw["b2"]
    mu, alpha = ma[:, :D], ma[:, D:]
    if use_tanh:
        alpha = jnp.tanh(alpha)
    u = (x - mu) * jnp.exp(-alpha)
    return u * scale, jnp.sum(-alpha + math.log(scale), axis=-1)


# ---------------------------------- Main --------------------------------------

if __name__ == "__main__":
    B, D, C, H = 8, 16, 8, 32          # batch, num_input, context dim, hidden_size
    use_tanh = True
    scale = 1.0                         # module sets self.scale = 1.0 in __init__

    key = jax.random.PRNGKey(0)
    kx, kc, kp = jax.random.split(key, 3)
    x = jax.random.normal(kx, (B, D), jnp.float32)
    context = jax.random.normal(kc, (B, C), jnp.float32)

    raw_params = make_made_params(kp, D, C, H)
    kparams = prepare_kernel_params(raw_params, D, group=4)   # G=4: safe on v5e too

    u, log_det = autoregressive_inverse_and_log_prob(
        x, context, kparams, use_tanh=use_tanh, scale=scale)
    u = jax.block_until_ready(u)
    log_det = jax.block_until_ready(log_det)

    u_ref, ld_ref = _reference(x, context, raw_params, num_input=D,
                               use_tanh=use_tanh, scale=scale)
    assert u.shape == (B, D) and log_det.shape == (B,)
    assert jnp.allclose(u, u_ref, atol=1e-4, rtol=1e-4)
    assert jnp.allclose(log_det, ld_ref, atol=1e-4, rtol=1e-4)

    print("KERNEL_OK")
</pallas_src>

<mosaic_0001>
module attributes {stable_mosaic.version = 11 : i64} {
  func.func @_maf_kernel(%arg0: i32, %arg1: memref<8x96xf32, #tpu.memory_space<vmem>>, %arg2: memref<96x128xbf16, #tpu.memory_space<vmem>>, %arg3: memref<1x128xf32, #tpu.memory_space<vmem>>, %arg4: memref<128x128xbf16, #tpu.memory_space<vmem>>, %arg5: memref<1x128xf32, #tpu.memory_space<vmem>>, %arg6: memref<8x64xf32, #tpu.memory_space<vmem>>, %arg7: memref<8x4xf32, #tpu.memory_space<vmem>>) attributes {dimension_semantics = [#tpu.dimension_semantics<parallel>], iteration_bounds = array<i64: 1>, scalar_prefetch = 0 : i64, scratch_operands = 0 : i64, tpu.core_type = #tpu.core_type<tc>, window_params = [{transform_indices = @transform_0, window_bounds = array<i64: 8, 96>}, {pipeline_mode = #tpu.pipeline_mode<synchronous>, transform_indices = @transform_1, window_bounds = array<i64: 96, 128>}, {pipeline_mode = #tpu.pipeline_mode<synchronous>, transform_indices = @transform_2, window_bounds = array<i64: 1, 128>}, {pipeline_mode = #tpu.pipeline_mode<synchronous>, transform_indices = @transform_3, window_bounds = array<i64: 128, 128>}, {pipeline_mode = #tpu.pipeline_mode<synchronous>, transform_indices = @transform_4, window_bounds = array<i64: 1, 128>}, {transform_indices = @transform_5, window_bounds = array<i64: 8, 64>}, {transform_indices = @transform_6, window_bounds = array<i64: 8, 4>}]} {
    %c0 = arith.constant 0 : index
    %c0_0 = arith.constant 0 : index
    %0 = vector.load %arg1[%c0, %c0_0] : memref<8x96xf32, #tpu.memory_space<vmem>>, vector<8x96xf32>
    %1 = vector.extract_strided_slice %0 {offsets = [0, 0], sizes = [8, 64], strides = [1, 1]} : vector<8x96xf32> to vector<8x64xf32>
    %2 = arith.truncf %0 : vector<8x96xf32> to vector<8x96xbf16>
    %c0_1 = arith.constant 0 : index
    %c0_2 = arith.constant 0 : index
    %3 = vector.load %arg2[%c0_1, %c0_2] : memref<96x128xbf16, #tpu.memory_space<vmem>>, vector<96x128xbf16>
    %cst = arith.constant dense<0.000000e+00> : vector<8x128xf32>
    %4 = tpu.matmul %2, %3, %cst {dimension_numbers = #tpu.dot_dimension_numbers<[1], [0], [0], [1], [0, 0, 1, 1], [], []>} : vector<8x96xbf16>, vector<96x128xbf16>, vector<8x128xf32> -> vector<8x128xf32>
    %c0_3 = arith.constant 0 : index
    %c0_4 = arith.constant 0 : index
    %5 = vector.load %arg3[%c0_3, %c0_4] : memref<1x128xf32, #tpu.memory_space<vmem>>, vector<1x128xf32>
    %6 = vector.broadcast %5 : vector<1x128xf32> to vector<8x128xf32>
    %7 = arith.addf %4, %6 : vector<8x128xf32>
    %cst_5 = arith.constant 0.000000e+00 : f32
    %8 = vector.broadcast %cst_5 : f32 to vector<8x128xf32>
    %9 = arith.maximumf %7, %8 : vector<8x128xf32>
    %10 = arith.truncf %9 : vector<8x128xf32> to vector<8x128xbf16>
    %c0_6 = arith.constant 0 : index
    %c0_7 = arith.constant 0 : index
    %11 = vector.load %arg4[%c0_6, %c0_7] : memref<128x128xbf16, #tpu.memory_space<vmem>>, vector<128x128xbf16>
    %cst_8 = arith.constant dense<0.000000e+00> : vector<8x128xf32>
    %12 = tpu.matmul %10, %11, %cst_8 {dimension_numbers = #tpu.dot_dimension_numbers<[1], [0], [0], [1], [0, 0, 1, 1], [], []>} : vector<8x128xbf16>, vector<128x128xbf16>, vector<8x128xf32> -> vector<8x128xf32>
    %c0_9 = arith.constant 0 : index
    %c0_10 = arith.constant 0 : index
    %13 = vector.load %arg5[%c0_9, %c0_10] : memref<1x128xf32, #tpu.memory_space<vmem>>, vector<1x128xf32>
    %14 = vector.broadcast %13 : vector<1x128xf32> to vector<8x128xf32>
    %15 = arith.addf %12, %14 : vector<8x128xf32>
    %16 = vector.extract_strided_slice %15 {offsets = [0, 0], sizes = [8, 64], strides = [1, 1]} : vector<8x128xf32> to vector<8x64xf32>
    %17 = vector.extract_strided_slice %15 {offsets = [0, 64], sizes = [8, 64], strides = [1, 1]} : vector<8x128xf32> to vector<8x64xf32>
    %18 = math.tanh %17 : vector<8x64xf32>
    %19 = arith.subf %1, %16 : vector<8x64xf32>
    %cst_11 = arith.constant 0.000000e+00 : f32
    %20 = vector.broadcast %cst_11 : f32 to vector<8x64xf32>
    %21 = arith.subf %20, %18 : vector<8x64xf32>
    %22 = math.exp %21 : vector<8x64xf32>
    %23 = arith.mulf %19, %22 : vector<8x64xf32>
    %c0_12 = arith.constant 0 : index
    %c0_13 = arith.constant 0 : index
    %24 = vector.load %arg6[%c0_12, %c0_13] : memref<8x64xf32, #tpu.memory_space<vmem>>, vector<8x64xf32>
    tpu.vector_store %arg6[%c0_12, %c0_13], %23 {strides = array<i32>} : memref<8x64xf32, #tpu.memory_space<vmem>>, vector<8x64xf32>,
    %25 = vector.extract_strided_slice %18 {offsets = [0, 0], sizes = [8, 16], strides = [1, 1]} : vector<8x64xf32> to vector<8x16xf32>
    %cst_14 = arith.constant dense<0.000000e+00> : vector<8xf32>
    %26 = vector.multi_reduction <add>, %25, %cst_14 [1] : vector<8x16xf32> to vector<8xf32>
    %27 = vector.shape_cast %26 : vector<8xf32> to vector<8x1xf32>
    %cst_15 = arith.constant 0.000000e+00 : f32
    %28 = vector.broadcast %cst_15 : f32 to vector<8x1xf32>
    %29 = arith.subf %28, %27 : vector<8x1xf32>
    %30 = vector.extract_strided_slice %18 {offsets = [0, 16], sizes = [8, 16], strides = [1, 1]} : vector<8x64xf32> to vector<8x16xf32>
    %cst_16 = arith.constant dense<0.000000e+00> : vector<8xf32>
    %31 = vector.multi_reduction <add>, %30, %cst_16 [1] : vector<8x16xf32> to vector<8xf32>
    %32 = vector.shape_cast %31 : vector<8xf32> to vector<8x1xf32>
    %cst_17 = arith.constant 0.000000e+00 : f32
    %33 = vector.broadcast %cst_17 : f32 to vector<8x1xf32>
    %34 = arith.subf %33, %32 : vector<8x1xf32>
    %35 = vector.extract_strided_slice %18 {offsets = [0, 32], sizes = [8, 16], strides = [1, 1]} : vector<8x64xf32> to vector<8x16xf32>
    %cst_18 = arith.constant dense<0.000000e+00> : vector<8xf32>
    %36 = vector.multi_reduction <add>, %35, %cst_18 [1] : vector<8x16xf32> to vector<8xf32>
    %37 = vector.shape_cast %36 : vector<8xf32> to vector<8x1xf32>
    %cst_19 = arith.constant 0.000000e+00 : f32
    %38 = vector.broadcast %cst_19 : f32 to vector<8x1xf32>
    %39 = arith.subf %38, %37 : vector<8x1xf32>
    %40 = vector.extract_strided_slice %18 {offsets = [0, 48], sizes = [8, 16], strides = [1, 1]} : vector<8x64xf32> to vector<8x16xf32>
    %cst_20 = arith.constant dense<0.000000e+00> : vector<8xf32>
    %41 = vector.multi_reduction <add>, %40, %cst_20 [1] : vector<8x16xf32> to vector<8xf32>
    %42 = vector.shape_cast %41 : vector<8xf32> to vector<8x1xf32>
    %cst_21 = arith.constant 0.000000e+00 : f32
    %43 = vector.broadcast %cst_21 : f32 to vector<8x1xf32>
    %44 = arith.subf %43, %42 : vector<8x1xf32>
    %45 = tpu.concatenate %29, %34, %39, %44 in 1 : vector<8x1xf32>, vector<8x1xf32>, vector<8x1xf32>, vector<8x1xf32> -> vector<8x4xf32>
    %c0_22 = arith.constant 0 : index
    %c0_23 = arith.constant 0 : index
    %46 = vector.load %arg7[%c0_22, %c0_23] : memref<8x4xf32, #tpu.memory_space<vmem>>, vector<8x4xf32>
    tpu.vector_store %arg7[%c0_22, %c0_23], %45 {strides = array<i32>} : memref<8x4xf32, #tpu.memory_space<vmem>>, vector<8x4xf32>,
    return
  }
  func.func @transform_0(%arg0: i32) -> (i32, i32) {
    %c0_i32 = arith.constant 0 : i32
    %c0_i32_0 = arith.constant 0 : i32
    return %arg0, %c0_i32 : i32, i32
  }
  func.func @transform_1(%arg0: i32) -> (i32, i32) {
    %c0_i32 = arith.constant 0 : i32
    %c0_i32_0 = arith.constant 0 : i32
    %c0_i32_1 = arith.constant 0 : i32
    return %c0_i32, %c0_i32_0 : i32, i32
  }
  func.func @transform_2(%arg0: i32) -> (i32, i32) {
    %c0_i32 = arith.constant 0 : i32
    %c0_i32_0 = arith.constant 0 : i32
    %c0_i32_1 = arith.constant 0 : i32
    return %c0_i32, %c0_i32_0 : i32, i32
  }
  func.func @transform_3(%arg0: i32) -> (i32, i32) {
    %c0_i32 = arith.constant 0 : i32
    %c0_i32_0 = arith.constant 0 : i32
    %c0_i32_1 = arith.constant 0 : i32
    return %c0_i32, %c0_i32_0 : i32, i32
  }
  func.func @transform_4(%arg0: i32) -> (i32, i32) {
    %c0_i32 = arith.constant 0 : i32
    %c0_i32_0 = arith.constant 0 : i32
    %c0_i32_1 = arith.constant 0 : i32
    return %c0_i32, %c0_i32_0 : i32, i32
  }
  func.func @transform_5(%arg0: i32) -> (i32, i32) {
    %c0_i32 = arith.constant 0 : i32
    %c0_i32_0 = arith.constant 0 : i32
    return %arg0, %c0_i32 : i32, i32
  }
  func.func @transform_6(%arg0: i32) -> (i32, i32) {
    %c0_i32 = arith.constant 0 : i32
    %c0_i32_0 = arith.constant 0 : i32
    return %arg0, %c0_i32 : i32, i32
  }
}

</mosaic_0001>

<bundles_post_ra>
// kernel: tpu_custom_call.1
= control target key start
LH: loop header
LB: loop body
LE: loop exit
PB: predicated region body
PF: predicated region fallthrough
CT: control target
= control target key end

     0   :  { %12 = vsyncpa [#allocation3], 0  ;;  %s655_s0 = inlined_call_operand.hbm [shape: f32[8,96], index: 0, kind: input, shape index: {}]   ;;  %s656_s1 = inlined_call_operand.hbm [shape: bf16[96,128], index: 1, kind: input, shape index: {}]   ;;  %s657_s2 = inlined_call_operand.vmem [shape: f32[1,128], index: 2, kind: input, shape index: {}]   ;;  %s658_s3 = inlined_call_operand.hbm [shape: bf16[128,128], index: 3, kind: input, shape index: {}]   ;;  %s659_s4 = inlined_call_operand.vmem [shape: f32[1,128], index: 4, kind: input, shape index: {}]   ;;  %s660_s5 = inlined_call_operand.hbm [shape: f32[8,64], index: 5, kind: output, shape index: {0}]   ;;  %s661_s6 = inlined_call_operand.vmem [shape: f32[8,4], index: 6, kind: output, shape index: {1}]  }
   0x1   :  { %13 = vsyncpa [#allocation6], 0 }
   0x2   :  { %14 = vsyncpa [#allocation4], 0  ;;  %s539_s21 = smov [#allocation5]   ;;  %s445_s25 = scalar_lea.hbm %s656_s1, 768 }
   0x3   :  { %s30_s22 = sshll.u32 %s539_s21, 4  ;;  %p446_p0 = scmp.ne.s32.totalorder %s656_s1, %s445_s25  ;;  %s31_s22 = int_to_ptr.vmem [resolvable:$true] %s30_s22 }
   0x4   :  { %p449_p1 = scmp.lt.u32.totalorder %s445_s25, %s656_s1 }
   0x6   :  { %p451_p2 = pnand %p449_p1, %p446_p0 }
   0x8   :  { %454 = shalt.err (!%p451_p2)
}
   0x9   :  { %s455_s30 = scalar_lea.vmem %s31_s22, 768  ;;  %p460_p4 = scmp.lt.s32.totalorder %s31_s22, %s31_s22 }
   0xa   :  { %p456_p3 = scmp.ne.s32.totalorder %s31_s22, %s455_s30  ;;  %p461_p5 = scmp.lt.s32.totalorder %s455_s30, %s455_s30 }
   0xc   :  { %p462_p6 = por %p461_p5, %p460_p4 }
   0xe   :  { %p463_p7 = pnand %p462_p6, %p456_p3 }
  0x10   :  { %466 = shalt.err (!%p463_p7)
}
  0x11   :  { %s540_s7 = smov 64   ;;  %s541_s8 = smov 4  }
  0x12   :  { %36 = dma.hbm_to_vmem [thread:$0]  %s656_s1, 768, %s31_s22, [#allocation6], %s540_s7, %s540_s7, %s541_s8  }
  0x13   :  { %s542_s11 = smov [#allocation2]   ;;  %s543_s13 = smov [#allocation7]  }
  0x14   :  { %s21_s12 = sshll.u32 %s542_s11, 4  ;;  %s44_s14 = sshll.u32 %s543_s13, 4  ;;  %s22_s12 = int_to_ptr.vmem [resolvable:$true] %s21_s12  ;;  %s45_s14 = int_to_ptr.vmem [resolvable:$true] %s44_s14 }
  0x15   :  { %s467_s17 = scalar_lea.hbm %s655_s0, 128 }
  0x16   :  { %p468_p8 = scmp.ne.s32.totalorder %s655_s0, %s467_s17  ;;  %p471_p9 = scmp.lt.u32.totalorder %s467_s17, %s655_s0 }
  0x18   :  { %p473_p10 = pnand %p471_p9, %p468_p8 }
  0x1a   :  { %476 = shalt.err (!%p473_p10)
}
  0x1b   :  { %s477_s1 = scalar_lea.vmem %s22_s12, 128  ;;  %p482_p12 = scmp.lt.s32.totalorder %s22_s12, %s22_s12 }
  0x1c   :  { %p478_p11 = scmp.ne.s32.totalorder %s22_s12, %s477_s1  ;;  %p483_p13 = scmp.lt.s32.totalorder %s477_s1, %s477_s1 }
  0x1e   :  { %p484_p0 = por %p483_p13, %p482_p12 }
  0x20   :  { %p485_p1 = pnand %p484_p0, %p478_p11 }
  0x22   :  { %488 = shalt.err (!%p485_p1)
}
  0x23   :  { %24 = dma.hbm_to_vmem [thread:$0]  %s655_s0, 128, %s22_s12, [#allocation3]  }
  0x24   :  { %s489_s26 = scalar_lea.hbm %s658_s3, 1024 }
  0x25   :  { %p490_p2 = scmp.ne.s32.totalorder %s658_s3, %s489_s26  ;;  %p493_p3 = scmp.lt.u32.totalorder %s489_s26, %s658_s3 }
  0x27   :  { %p495_p4 = pnand %p493_p3, %p490_p2 }
  0x29   :  { %498 = shalt.err (!%p495_p4)
}
  0x2a   :  { %s499_s9 = scalar_lea.vmem %s45_s14, 1024  ;;  %p504_p6 = scmp.lt.s32.totalorder %s45_s14, %s45_s14 }
  0x2b   :  { %p500_p5 = scmp.ne.s32.totalorder %s45_s14, %s499_s9  ;;  %p505_p7 = scmp.lt.s32.totalorder %s499_s9, %s499_s9 }
  0x2d   :  { %p506_p8 = por %p505_p7, %p504_p6 }
  0x2f   :  { %p507_p9 = pnand %p506_p8, %p500_p5 }
  0x31   :  { %510 = shalt.err (!%p507_p9)
}
  0x32   :  { %50 = dma.hbm_to_vmem [thread:$0]  %s658_s3, 1024, %s45_s14, [#allocation6], %s540_s7, %s540_s7, %s541_s8  }
  0x33   :  { %533 = dma.done.wait [#allocation3], 128  }
  0x34   :  { %534 = vsyncadd [#allocation3], 4294967168 }
  0x35   :  { %535 = dma.done.wait [#allocation6], 1792  }
  0x36   :  { %536 = vsyncadd [#allocation6], 4294965504  ;;  %v544_v0 = vmov 0.0   ;;  %vm545_vm0 = vmmov 0   ;;  %v427_v1 = vld [vmem:[#allocation5] sm:$0xff]   ;;  %v428_v2 = vld [vmem:[#allocation5 + $0x8] sm:$0xff]  }
  0x37   :  { %380 = vmatprep.subr.bf16.mxu0 %v544_v0  ;;  %392 = vmatprep.mubr.msk.bf16.mxu0 %vm545_vm0, %v544_v0  ;;  %v429_v3 = vld [vmem:[#allocation5 + $0x10] sm:$0xff]   ;;  %v434_v5 = vld [vmem:[#allocation7 + $0x8] sm:$0xff]   ;;  %v435_v7 = vld [vmem:[#allocation7 + $0x10] sm:$0xff]   ;;  %vm120_vm1 = vcmask 785408   ;;  %s547_s13 = smov 16   ;;  %s548_s14 = smov 48  }
  0x38   :  { %396 = vmatprep.subr.bf16.mxu1 %v544_v0  ;;  %412 = vmatprep.mubr.msk.bf16.mxu1 %vm545_vm0, %v544_v0  ;;  %v433_v4 = vld [vmem:[#allocation7] sm:$0xff]   ;;  %v430_v6 = vld [vmem:[#allocation5 + $0x18] sm:$0xff]   ;;  %v431_v8 = vld [vmem:[#allocation5 + $0x20] sm:$0xff]   ;;  %vm293_vm2 = vcmask 130048   ;;  %vm287_vm3 = vcmask 523264  }
  0x39   :  { %381 = vmatpush3.bf16.msra.mxu0 %v427_v1  ;;  %397 = vmatpush3.bf16.msra.mxu1 %v433_v4  ;;  %v436_v9 = vld [vmem:[#allocation7 + $0x18] sm:$0xff]   ;;  %v627_v11 = vld [vmem:[#allocation2] sm:$0xff]  ;;  %v437_v13 = vld [vmem:[#allocation7 + $0x20] sm:$0xff]  }
  0x3a   :  { %382 = vmatprep.subr.bf16.mxu0 %v544_v0  ;;  %398 = vmatprep.subr.bf16.mxu1 %v544_v0  ;;  %v432_v10 = vld [vmem:[#allocation5 + $0x28] sm:$0xff]   ;;  %v64_v12 = vpack.c.bf16 %v627_v11, %v627_v11  ;;  %v438_v14 = vld [vmem:[#allocation7 + $0x28] sm:$0xff]   ;;  %v439_v15 = vld [vmem:[#allocation7 + $0x30] sm:$0xff]  }
  0x3b   :  { %v440_v16 = vld [vmem:[#allocation7 + $0x38] sm:$0xff]   ;;  %v347_v17 = vld [vmem:[%s657_s2] ss:$0 sm:$0xff]  ;;  %s546_s2 = smov 32  }
  0x3c   :  { %v355_v25 = vld [vmem:[%s659_s4] ss:$0 sm:$0xff]  ;;  %s549_s4 = smov [#allocation8]  }
  0x3d   :  { %383 = vmatpush3.bf16.msra.mxu0 %v428_v2  ;;  %399 = vmatpush3.bf16.msra.mxu1 %v434_v5 }
  0x3e   :  { %384 = vmatprep.subr.bf16.mxu0 %v544_v0  ;;  %400 = vmatprep.subr.bf16.mxu1 %v544_v0 }
  0x41   :  { %385 = vmatpush3.bf16.msra.mxu0 %v429_v3  ;;  %401 = vmatpush3.bf16.msra.mxu1 %v435_v7 }
  0x42   :  { %386 = vmatprep.subr.bf16.mxu0 %v544_v0  ;;  %402 = vmatprep.subr.bf16.mxu1 %v544_v0 }
  0x45   :  { %387 = vmatpush3.bf16.msra.mxu0 %v430_v6  ;;  %403 = vmatpush3.bf16.msra.mxu1 %v436_v9 }
  0x46   :  { %388 = vmatprep.subr.bf16.mxu0 %v544_v0  ;;  %404 = vmatprep.subr.bf16.mxu1 %v544_v0 }
  0x49   :  { %389 = vmatpush3.bf16.msra.mxu0 %v431_v8  ;;  %405 = vmatpush3.bf16.msra.mxu1 %v437_v13 }
  0x4a   :  { %390 = vmatprep.subr.bf16.mxu0 %v544_v0  ;;  %406 = vmatprep.subr.bf16.mxu1 %v544_v0 }
  0x4d   :  { %391 = vmatpush3.bf16.msra.mxu0 %v432_v10  ;;  %407 = vmatpush3.bf16.msra.mxu1 %v438_v14 }
  0x4e   :  { %408 = vmatprep.subr.bf16.mxu1 %v544_v0 }
  0x50   :  { %393 = vmatmul.mubr.msk.bf16.vlgmr.msra.gmra.mrb[0].mxu0 %vm120_vm1, %v64_v12 }
  0x51   :  { %409 = vmatpush3.bf16.msra.mxu1 %v439_v15 }
  0x52   :  { %410 = vmatprep.subr.bf16.mxu1 %v544_v0 }
  0x55   :  { %411 = vmatpush3.bf16.msra.mxu1 %v440_v16 }
 0x123   :  { %v158_v18 = vpop.f32.mrb[0].mxu0 }
 0x124   :  { %v159_v19 = vadd.f32 %v347_v17, %v158_v18  ;;  %v394_v20 = vpop.f32.mrb[1].mxu0 }
 0x125   :  { %v161_v21 = vpop.f32.mrb[2].mxu0 }
 0x126   :  { %v164_v22 = vmax.f32 %v159_v19, 0.0  ;;  %v395_v23 = vpop.f32.mrb[3].mxu0 }
 0x128   :  { %v165_v24 = vpack.c.bf16 %v164_v22, %v164_v22 }
 0x12a   :  { %413 = vmatmul.mubr.bf16.vlgmr.msra.gmra.mrb[0].mxu1 %v165_v24 }
 0x1fd   :  { %v271_v26 = vpop.f32.mrb[0].mxu1 }
 0x1fe   :  { %v272_v27 = vadd.f32 %v355_v25, %v271_v26  ;;  %v414_v28 = vpop.f32.mrb[1].mxu1 }
 0x1ff   :  { %v274_v29 = vpop.f32.mrb[2].mxu1 }
 0x200   :  { %441 = vtanh.f32 %v272_v27  ;;  %v415_v30 = vpop.f32.mrb[3].mxu1  ;;  %v278_v43 = vsub.f32 %v627_v11, %v272_v27 }
 0x20a   :  { %v442_v31 = vpop.eup %441 }
 0x20b   :  { %305 = vrot.lane.b32.xlu1 %v442_v31, %s546_s2  ;;  %290 = vrot.lane.b32.xlu0 %v442_v31, %s540_s7  ;;  %v279_v32 = vsub.f32 0.0, %v442_v31 }
 0x20d   :  { %v280_v33 = vmul.f32 1.442695, %v279_v32 }
 0x20f   :  { %312 = vrot.lane.b32.xlu1 %v442_v31, %s547_s13  ;;  %298 = vrot.lane.b32.xlu0 %v442_v31, %s548_s14  ;;  %443 = vpow2.f32 %v280_v33 }
 0x219   :  { %v444_v34 = vpop.eup %443 }
 0x21a   :  { %283 = vrot.lane.b32.xlu0 %v444_v34, %s540_s7  ;;  %s333_s7 = sshll.u32 %s549_s4, 4  ;;  %s334_s7 = int_to_ptr.vmem [resolvable:$true] %s333_s7 }
 0x21b   :  { %s511_s15 = scalar_lea.vmem %s334_s7, 128  ;;  %p516_p11 = scmp.lt.s32.totalorder %s334_s7, %s334_s7 }
 0x21c   :  { %p512_p10 = scmp.ne.s32.totalorder %s334_s7, %s511_s15  ;;  %p517_p12 = scmp.lt.s32.totalorder %s511_s15, %s511_s15 }
 0x21e   :  { %p518_p13 = por %p517_p12, %p516_p11 }
 0x220   :  { %p519_p0 = pnand %p518_p13, %p512_p10 }
 0x27d   :  { %v306_v35 = vpop.permute.xlu1 %305  ;;  %v291_v36 = vpop.permute.xlu0 %290 }
 0x27e   :  { %v294_v37 = vsel %vm293_vm2, %v291_v36, 0.0  ;;  %v308_v42 = vsel %vm293_vm2, %v306_v35, 0.0 }
 0x27f   :  { %295 = vadd.xlane.f32.xlu1 %v294_v37 }
 0x281   :  { %v313_v38 = vpop.permute.xlu1 %312  ;;  %v299_v39 = vpop.permute.xlu0 %298 }
 0x282   :  { %v315_v40 = vsel %vm293_vm2, %v313_v38, 0.0  ;;  %v301_v41 = vsel %vm293_vm2, %v299_v39, 0.0 }
 0x283   :  { %316 = vadd.xlane.f32.xlu1 %v315_v40  ;;  %302 = vadd.xlane.f32.xlu0 %v301_v41 }
 0x287   :  { %309 = vadd.xlane.f32.xlu0 %v308_v42 }
 0x28c   :  { %v284_v44 = vpop.permute.xlu0 %283 }
 0x28d   :  { %v286_v45 = vmul.f32 %v284_v44, %v278_v43 }
 0x28f   :  { %288 = vst.msk [vmem:[#allocation8] sm:$0xff] %vm287_vm3, %v286_v45 }
 0x290   :  { %522 = shalt.err (!%p519_p0)
}
 0x291   :  { %s523_s18 = scalar_lea.hbm %s660_s5, 128 }
 0x292   :  { %p524_p1 = scmp.ne.s32.totalorder %s660_s5, %s523_s18  ;;  %p527_p2 = scmp.lt.u32.totalorder %s523_s18, %s660_s5 }
 0x294   :  { %p529_p3 = pnand %p527_p2, %p524_p1 }
 0x296   :  { %532 = shalt.err (!%p529_p3)
}
 0x297   :  { %336 = dma.vmem_to_hbm [thread:$0]  %s334_s7, 128, %s660_s5, [#allocation4]   ;;  %vm319_vm4 = vcmask 7168   ;;  %vm321_vm5 = vcmask 15360   ;;  %vm323_vm6 = vcmask 23552   ;;  %vm325_vm7 = vcmask 31744  }
 0x30c   :  { %v296_v46 = vpop.xlane.xlu1 %295 }
 0x30d   :  { %v297_v50 = vsub.f32 0.0, %v296_v46 }
 0x310   :  { %v303_v47 = vpop.xlane.xlu0 %302  ;;  %v317_v49 = vpop.xlane.xlu1 %316 }
 0x311   :  { %v304_v48 = vsub.f32 0.0, %v303_v47  ;;  %v318_v53 = vsub.f32 0.0, %v317_v49 }
 0x313   :  { %v320_v54 = vsel %vm319_vm4, %v297_v50, %v304_v48 }
 0x314   :  { %v310_v51 = vpop.xlane.xlu0 %309 }
 0x315   :  { %v311_v52 = vsub.f32 0.0, %v310_v51 }
 0x317   :  { %v322_v55 = vsel %vm321_vm5, %v320_v54, %v311_v52 }
 0x318   :  { %v324_v56 = vsel %vm323_vm6, %v322_v55, %v318_v53 }
 0x319   :  { %326 = vst.msk [vmem:[%s661_s6] sm:$0xff] %vm325_vm7, %v324_v56 }
 0x31a   :  { %537 = dma.done.wait [#allocation4], 128  }
 0x31b   :  { %538 = vsyncadd [#allocation4], 4294967168 }
 0x31c   :  { %344 = vsyncpa [#allocation3], 1 }
 0x31d   :  { %345 = vsyncpa [#allocation6], 1 }
 0x31e   :  { %346 = vsyncpa [#allocation4], 1 }

</bundles_post_ra>
